<compile_context>
chip_gen: v7x
topology: tpu7x:2x2x1
jax: 0.10.0
libtpu: 0.0.40
codegen_flags: <defaults>
</compile_context>

<pallas_src>
import jax
import jax.numpy as jnp
from jax.scipy.linalg import block_diag
from jax.experimental import pallas as pl
from jax.experimental.pallas import tpu as pltpu

B, T, D, H, DFF = 2, 8, 32, 4, 64
DK = D // H
BT = B * T
WMAX = max(3 * D, DFF)
EPS = 1e-6
NEG_INF = -1e9


def _layernorm(v, a, b):
    # torch: a * (x - mean) / (std + eps) + b, with unbiased std (ddof=1).
    # approx reciprocal (EUP slot) refined with one Newton step.
    n = v.shape[-1]
    mean = jnp.sum(v, axis=-1, keepdims=True) * (1.0 / n)
    c = v - mean
    var = jnp.sum(c * c, axis=-1, keepdims=True) * (1.0 / (n - 1))
    denom = jnp.sqrt(var) + EPS
    inv0 = pl.reciprocal(denom, approx=True)
    inv = inv0 * (2.0 - denom * inv0)          # Newton step -> near-exact
    return a * c * inv + b


def encoder_layer_kernel(x_ref, bias_ref, wqkv_ref, wo_ref, w1_ref, w2_ref,
                         vecd_ref, vecw_ref, out_ref):
    x = x_ref[...]                              # (BT, D), whole batch at once

    # Packed small parameter slabs (row slices keep (1, *) for broadcasting).
    ln1a = vecd_ref[0:1, :]
    ln1b = vecd_ref[1:2, :]
    bo   = vecd_ref[2:3, :]
    ln2a = vecd_ref[3:4, :]
    ln2b = vecd_ref[4:5, :]
    b2   = vecd_ref[5:6, :]
    bqkv = vecw_ref[0:1, 0:3 * D]               # (1, 3D)  (scale folded into q part)
    b1   = vecw_ref[1:2, 0:DFF]                 # (1, DFF)

    # ---- sublayer 0: multi-head self-attention on LayerNorm(x) ----
    xn = _layernorm(x, ln1a, ln1b)

    # One flat QKV matmul: (BT, 3D). 1/sqrt(DK) already folded into Wq/bq.
    qkv = jnp.dot(xn, wqkv_ref[...], preferred_element_type=jnp.float32) + bqkv

    def split_heads(m):                         # (BT, D) -> (H, BT, DK)
        return m.reshape(BT, H, DK).transpose(1, 0, 2)

    qh = split_heads(qkv[:, 0:D])
    kh = split_heads(qkv[:, D:2 * D])
    vh = split_heads(qkv[:, 2 * D:3 * D])

    # All heads, all rows at once; block-diagonal bias keeps batches separate.
    s = jnp.einsum('hnk,hmk->hnm', qh, kh,
                   preferred_element_type=jnp.float32)           # (H, BT, BT)
    s = s + bias_ref[...][None]
    s = s - jnp.max(s, axis=-1, keepdims=True)
    p = jnp.exp(s)
    p = p * pl.reciprocal(jnp.sum(p, axis=-1, keepdims=True), approx=True)

    ctx = jnp.einsum('hnm,hmk->hnk', p, vh,
                     preferred_element_type=jnp.float32)          # (H, BT, DK)
    # Head merge folded into the Wo contraction: flatten heads back into the
    # lane dim and hit the flat (D, D) output projection with one matmul.
    ctx_flat = ctx.transpose(1, 0, 2).reshape(BT, D)
    attn = jnp.dot(ctx_flat, wo_ref[...],
                   preferred_element_type=jnp.float32) + bo       # (BT, D)
    res1 = x + attn            # residual (stride=1 pooling, trans=None are identity)

    # ---- sublayer 1: position-wise feed-forward on LayerNorm(res1) ----
    rn = _layernorm(res1, ln2a, ln2b)
    h1 = jnp.dot(rn, w1_ref[...], preferred_element_type=jnp.float32) + b1
    h1 = jnp.maximum(h1, 0.0)
    ffn = jnp.dot(h1, w2_ref[...], preferred_element_type=jnp.float32) + b2

    out_ref[...] = res1 + ffn


def encoder_layer(x, mask, params):
    (ln1a, ln1b, wq, bq, wk, bk, wv, bv, wo, bo,
     ln2a, ln2b, w1, b1, w2, b2) = params

    # ---- wrapper-side (plain XLA, outside the kernel) repacking ----
    x2 = x.reshape(BT, D)                                        # fold batch into rows

    # Block-diagonal additive mask bias over the flattened rows: cross-batch
    # entries are -1e9, in-batch entries follow the provided (causal) mask.
    full_mask = block_diag(*[mask[b] for b in range(B)])         # (BT, BT)
    mask_bias = jnp.where(full_mask > 0, 0.0, NEG_INF).astype(jnp.float32)

    # Flat QKV weight with the attention scale folded into the Q block.
    scale = 1.0 / (DK ** 0.5)
    wqkv = jnp.concatenate([wq * scale, wk, wv], axis=1)         # (D, 3D)
    bqkv = jnp.concatenate([bq[0] * scale, bk[0], bv[0]])        # (3D,)

    # Pack the tiny bias/scale vectors into two slabs (fewer, bigger DMAs).
    vecd = jnp.zeros((8, D), jnp.float32)
    vecd = (vecd.at[0].set(ln1a[0]).at[1].set(ln1b[0]).at[2].set(bo[0])
                .at[3].set(ln2a[0]).at[4].set(ln2b[0]).at[5].set(b2[0]))
    vecw = jnp.zeros((8, WMAX), jnp.float32)
    vecw = vecw.at[0, :3 * D].set(bqkv).at[1, :DFF].set(b1[0])

    args = (x2, mask_bias, wqkv, wo, w1, w2, vecd, vecw)
    in_specs = [pl.BlockSpec(memory_space=pltpu.MemorySpace.VMEM) for _ in args]

    out2 = pl.pallas_call(
        encoder_layer_kernel,
        out_shape=jax.ShapeDtypeStruct((BT, D), jnp.float32),
        in_specs=in_specs,
        out_specs=pl.BlockSpec(memory_space=pltpu.MemorySpace.VMEM),
    )(*args)
    return out2.reshape(B, T, D)


# ---------------- pure-JAX reference (independent of the kernel) ----------------
def _layernorm_ref(v, a, b):
    mean = jnp.mean(v, axis=-1, keepdims=True)
    var = jnp.sum((v - mean) ** 2, axis=-1, keepdims=True) / (v.shape[-1] - 1)
    return a * (v - mean) / (jnp.sqrt(var) + EPS) + b


def reference(x, mask, params):
    (ln1a, ln1b, wq, bq, wk, bk, wv, bv, wo, bo,
     ln2a, ln2b, w1, b1, w2, b2) = params
    outs = []
    for bidx in range(B):
        xb, mb = x[bidx], mask[bidx]
        xn = _layernorm_ref(xb, ln1a[0], ln1b[0])
        q = xn @ wq + bq[0]
        k = xn @ wk + bk[0]
        v = xn @ wv + bv[0]
        heads = []
        for h in range(H):
            qh, kh, vh = (q[:, h*DK:(h+1)*DK], k[:, h*DK:(h+1)*DK], v[:, h*DK:(h+1)*DK])
            s = (qh @ kh.T) / jnp.sqrt(jnp.float32(DK))
            s = jnp.where(mb > 0, s, NEG_INF)
            p = jax.nn.softmax(s, axis=-1)
            heads.append(p @ vh)
        attn = jnp.concatenate(heads, axis=-1) @ wo + bo[0]
        r1 = xb + attn
        rn = _layernorm_ref(r1, ln2a[0], ln2b[0])
        ffn = jnp.maximum(rn @ w1 + b1[0], 0.0) @ w2 + b2[0]
        outs.append(r1 + ffn)
    return jnp.stack(outs)


if __name__ == "__main__":
    key = jax.random.PRNGKey(0)
    keys = jax.random.split(key, 8)

    x = jax.random.normal(keys[0], (B, T, D), dtype=jnp.float32)
    # causal mask, broadcast over batch: (B, T, T), 1.0 = attend
    mask = jnp.broadcast_to(jnp.tril(jnp.ones((T, T), jnp.float32)), (B, T, T))

    def w(k, shape):
        return (0.02 * jax.random.normal(k, shape)).astype(jnp.float32)

    params = (
        jnp.ones((1, D), jnp.float32),   # ln1 a
        jnp.zeros((1, D), jnp.float32),  # ln1 b
        w(keys[1], (D, D)), jnp.zeros((1, D), jnp.float32),      # Wq, bq
        w(keys[2], (D, D)), jnp.zeros((1, D), jnp.float32),      # Wk, bk
        w(keys[3], (D, D)), jnp.zeros((1, D), jnp.float32),      # Wv, bv
        w(keys[4], (D, D)), jnp.zeros((1, D), jnp.float32),      # Wo, bo
        jnp.ones((1, D), jnp.float32),   # ln2 a
        jnp.zeros((1, D), jnp.float32),  # ln2 b
        w(keys[5], (D, DFF)), jnp.zeros((1, DFF), jnp.float32),  # W1, b1
        w(keys[6], (DFF, D)), jnp.zeros((1, D), jnp.float32),    # W2, b2
    )

    out = encoder_layer(x, mask, params)
    out = jax.block_until_ready(out)

    ref = reference(x, mask, params)
    assert out.shape == (B, T, D)
    # Tolerance 1e-3: approx (EUP) reciprocal in the softmax denominator and
    # slightly different summation/relayout order vs the pure-JAX reference.
    assert jnp.allclose(out, ref, rtol=1e-3, atol=1e-3), "mismatch vs JAX reference"

    print("KERNEL_OK")
</pallas_src>

<mosaic_0001>
module attributes {stable_mosaic.version = 11 : i64} {
  func.func @encoder_layer_kernel(%arg0: memref<16x32xf32, #tpu.memory_space<vmem>>, %arg1: memref<16x16xf32, #tpu.memory_space<vmem>>, %arg2: memref<32x96xf32, #tpu.memory_space<vmem>>, %arg3: memref<32x32xf32, #tpu.memory_space<vmem>>, %arg4: memref<32x64xf32, #tpu.memory_space<vmem>>, %arg5: memref<64x32xf32, #tpu.memory_space<vmem>>, %arg6: memref<8x32xf32, #tpu.memory_space<vmem>>, %arg7: memref<8x96xf32, #tpu.memory_space<vmem>>, %arg8: memref<16x32xf32, #tpu.memory_space<vmem>>) attributes {dimension_semantics = [], scalar_prefetch = 0 : i64, scratch_operands = 0 : i64, tpu.core_type = #tpu.core_type<tc>} {
    %c0 = arith.constant 0 : index
    %c0_0 = arith.constant 0 : index
    %0 = vector.load %arg0[%c0, %c0_0] : memref<16x32xf32, #tpu.memory_space<vmem>>, vector<16x32xf32>
    %c0_1 = arith.constant 0 : index
    %c0_2 = arith.constant 0 : index
    %1 = vector.load %arg6[%c0_1, %c0_2] : memref<8x32xf32, #tpu.memory_space<vmem>>, vector<1x32xf32>
    %c1 = arith.constant 1 : index
    %c0_3 = arith.constant 0 : index
    %2 = vector.load %arg6[%c1, %c0_3] : memref<8x32xf32, #tpu.memory_space<vmem>>, vector<1x32xf32>
    %c2 = arith.constant 2 : index
    %c0_4 = arith.constant 0 : index
    %3 = vector.load %arg6[%c2, %c0_4] : memref<8x32xf32, #tpu.memory_space<vmem>>, vector<1x32xf32>
    %c3 = arith.constant 3 : index
    %c0_5 = arith.constant 0 : index
    %4 = vector.load %arg6[%c3, %c0_5] : memref<8x32xf32, #tpu.memory_space<vmem>>, vector<1x32xf32>
    %c4 = arith.constant 4 : index
    %c0_6 = arith.constant 0 : index
    %5 = vector.load %arg6[%c4, %c0_6] : memref<8x32xf32, #tpu.memory_space<vmem>>, vector<1x32xf32>
    %c5 = arith.constant 5 : index
    %c0_7 = arith.constant 0 : index
    %6 = vector.load %arg6[%c5, %c0_7] : memref<8x32xf32, #tpu.memory_space<vmem>>, vector<1x32xf32>
    %c0_8 = arith.constant 0 : index
    %c0_9 = arith.constant 0 : index
    %7 = vector.load %arg7[%c0_8, %c0_9] : memref<8x96xf32, #tpu.memory_space<vmem>>, vector<1x96xf32>
    %c1_10 = arith.constant 1 : index
    %c0_11 = arith.constant 0 : index
    %8 = vector.load %arg7[%c1_10, %c0_11] : memref<8x96xf32, #tpu.memory_space<vmem>>, vector<1x64xf32>
    %cst = arith.constant dense<0.000000e+00> : vector<16xf32>
    %9 = vector.multi_reduction <add>, %0, %cst [1] : vector<16x32xf32> to vector<16xf32>
    %10 = vector.shape_cast %9 : vector<16xf32> to vector<16x1xf32>
    %cst_12 = arith.constant 3.125000e-02 : f32
    %11 = vector.broadcast %cst_12 : f32 to vector<16x1xf32>
    %12 = arith.mulf %10, %11 : vector<16x1xf32>
    %13 = vector.broadcast %12 : vector<16x1xf32> to vector<16x32xf32>
    %14 = arith.subf %0, %13 : vector<16x32xf32>
    %15 = arith.mulf %14, %14 : vector<16x32xf32>
    %cst_13 = arith.constant dense<0.000000e+00> : vector<16xf32>
    %16 = vector.multi_reduction <add>, %15, %cst_13 [1] : vector<16x32xf32> to vector<16xf32>
    %17 = vector.shape_cast %16 : vector<16xf32> to vector<16x1xf32>
    %cst_14 = arith.constant 0.0322580636 : f32
    %18 = vector.broadcast %cst_14 : f32 to vector<16x1xf32>
    %19 = arith.mulf %17, %18 : vector<16x1xf32>
    %20 = math.sqrt %19 : vector<16x1xf32>
    %cst_15 = arith.constant 9.99999997E-7 : f32
    %21 = vector.broadcast %cst_15 : f32 to vector<16x1xf32>
    %22 = arith.addf %20, %21 : vector<16x1xf32>
    %23 = tpu.reciprocal %22 {approx = true} : vector<16x1xf32> -> vector<16x1xf32>
    %24 = arith.mulf %22, %23 : vector<16x1xf32>
    %cst_16 = arith.constant 2.000000e+00 : f32
    %25 = vector.broadcast %cst_16 : f32 to vector<16x1xf32>
    %26 = arith.subf %25, %24 : vector<16x1xf32>
    %27 = arith.mulf %23, %26 : vector<16x1xf32>
    %28 = vector.broadcast %1 : vector<1x32xf32> to vector<16x32xf32>
    %29 = arith.mulf %28, %14 : vector<16x32xf32>
    %30 = vector.broadcast %27 : vector<16x1xf32> to vector<16x32xf32>
    %31 = arith.mulf %29, %30 : vector<16x32xf32>
    %32 = vector.broadcast %2 : vector<1x32xf32> to vector<16x32xf32>
    %33 = arith.addf %31, %32 : vector<16x32xf32>
    %c0_17 = arith.constant 0 : index
    %c0_18 = arith.constant 0 : index
    %34 = vector.load %arg2[%c0_17, %c0_18] : memref<32x96xf32, #tpu.memory_space<vmem>>, vector<32x96xf32>
    %cst_19 = arith.constant dense<0.000000e+00> : vector<16x96xf32>
    %35 = tpu.matmul %33, %34, %cst_19 {dimension_numbers = #tpu.dot_dimension_numbers<[1], [0], [0], [1], [0, 0, 1, 1], [], []>} : vector<16x32xf32>, vector<32x96xf32>, vector<16x96xf32> -> vector<16x96xf32>
    %36 = vector.broadcast %7 : vector<1x96xf32> to vector<16x96xf32>
    %37 = arith.addf %35, %36 : vector<16x96xf32>
    %38 = vector.extract_strided_slice %37 {offsets = [0, 0], sizes = [16, 32], strides = [1, 1]} : vector<16x96xf32> to vector<16x32xf32>
    %39 = vector.shape_cast %38 : vector<16x32xf32> to vector<16x4x8xf32>
    %40 = tpu.transpose %39, [1, 0, 2] : vector<16x4x8xf32> -> vector<4x16x8xf32>
    %41 = vector.extract_strided_slice %37 {offsets = [0, 32], sizes = [16, 32], strides = [1, 1]} : vector<16x96xf32> to vector<16x32xf32>
    %42 = vector.shape_cast %41 : vector<16x32xf32> to vector<16x4x8xf32>
    %43 = tpu.transpose %42, [1, 0, 2] : vector<16x4x8xf32> -> vector<4x16x8xf32>
    %44 = vector.extract_strided_slice %37 {offsets = [0, 64], sizes = [16, 32], strides = [1, 1]} : vector<16x96xf32> to vector<16x32xf32>
    %45 = vector.shape_cast %44 : vector<16x32xf32> to vector<16x4x8xf32>
    %46 = tpu.transpose %45, [1, 0, 2] : vector<16x4x8xf32> -> vector<4x16x8xf32>
    "tpu.trace_start"() <{level = 10 : i32, message = "hnk,hmk->hnm"}> : () -> ()
    %cst_20 = arith.constant dense<0.000000e+00> : vector<4x16x16xf32>
    %47 = tpu.matmul %40, %43, %cst_20 {dimension_numbers = #tpu.dot_dimension_numbers<[2], [2], [1], [1], [0, 0, 0, 1, 1, 1], [0], [0]>} : vector<4x16x8xf32>, vector<4x16x8xf32>, vector<4x16x16xf32> -> vector<4x16x16xf32>
    "tpu.trace_stop"() : () -> ()
    %c0_21 = arith.constant 0 : index
    %c0_22 = arith.constant 0 : index
    %48 = vector.load %arg1[%c0_21, %c0_22] : memref<16x16xf32, #tpu.memory_space<vmem>>, vector<16x16xf32>
    %49 = vector.shape_cast %48 : vector<16x16xf32> to vector<1x16x16xf32>
    %50 = vector.broadcast %49 : vector<1x16x16xf32> to vector<4x16x16xf32>
    %51 = arith.addf %47, %50 : vector<4x16x16xf32>
    %cst_23 = arith.constant dense<0xFF800000> : vector<4x16xf32>
    %52 = vector.multi_reduction <maximumf>, %51, %cst_23 [2] : vector<4x16x16xf32> to vector<4x16xf32>
    %53 = vector.shape_cast %52 : vector<4x16xf32> to vector<4x16x1xf32>
    %54 = vector.broadcast %53 : vector<4x16x1xf32> to vector<4x16x16xf32>
    %55 = arith.subf %51, %54 : vector<4x16x16xf32>
    %56 = math.exp %55 : vector<4x16x16xf32>
    %cst_24 = arith.constant dense<0.000000e+00> : vector<4x16xf32>
    %57 = vector.multi_reduction <add>, %56, %cst_24 [2] : vector<4x16x16xf32> to vector<4x16xf32>
    %58 = vector.shape_cast %57 : vector<4x16xf32> to vector<4x16x1xf32>
    %59 = tpu.reciprocal %58 {approx = true} : vector<4x16x1xf32> -> vector<4x16x1xf32>
    %60 = vector.broadcast %59 : vector<4x16x1xf32> to vector<4x16x16xf32>
    %61 = arith.mulf %56, %60 : vector<4x16x16xf32>
    "tpu.trace_start"() <{level = 10 : i32, message = "hnm,hmk->hnk"}> : () -> ()
    %cst_25 = arith.constant dense<0.000000e+00> : vector<4x16x8xf32>
    %62 = tpu.matmul %61, %46, %cst_25 {dimension_numbers = #tpu.dot_dimension_numbers<[2], [1], [1], [2], [0, 0, 0, 1, 1, 2], [0], [0]>} : vector<4x16x16xf32>, vector<4x16x8xf32>, vector<4x16x8xf32> -> vector<4x16x8xf32>
    "tpu.trace_stop"() : () -> ()
    %63 = tpu.transpose %62, [1, 0, 2] : vector<4x16x8xf32> -> vector<16x4x8xf32>
    %64 = vector.shape_cast %63 : vector<16x4x8xf32> to vector<16x32xf32>
    %c0_26 = arith.constant 0 : index
    %c0_27 = arith.constant 0 : index
    %65 = vector.load %arg3[%c0_26, %c0_27] : memref<32x32xf32, #tpu.memory_space<vmem>>, vector<32x32xf32>
    %cst_28 = arith.constant dense<0.000000e+00> : vector<16x32xf32>
    %66 = tpu.matmul %64, %65, %cst_28 {dimension_numbers = #tpu.dot_dimension_numbers<[1], [0], [0], [1], [0, 0, 1, 1], [], []>} : vector<16x32xf32>, vector<32x32xf32>, vector<16x32xf32> -> vector<16x32xf32>
    %67 = vector.broadcast %3 : vector<1x32xf32> to vector<16x32xf32>
    %68 = arith.addf %66, %67 : vector<16x32xf32>
    %69 = arith.addf %0, %68 : vector<16x32xf32>
    %cst_29 = arith.constant dense<0.000000e+00> : vector<16xf32>
    %70 = vector.multi_reduction <add>, %69, %cst_29 [1] : vector<16x32xf32> to vector<16xf32>
    %71 = vector.shape_cast %70 : vector<16xf32> to vector<16x1xf32>
    %cst_30 = arith.constant 3.125000e-02 : f32
    %72 = vector.broadcast %cst_30 : f32 to vector<16x1xf32>
    %73 = arith.mulf %71, %72 : vector<16x1xf32>
    %74 = vector.broadcast %73 : vector<16x1xf32> to vector<16x32xf32>
    %75 = arith.subf %69, %74 : vector<16x32xf32>
    %76 = arith.mulf %75, %75 : vector<16x32xf32>
    %cst_31 = arith.constant dense<0.000000e+00> : vector<16xf32>
    %77 = vector.multi_reduction <add>, %76, %cst_31 [1] : vector<16x32xf32> to vector<16xf32>
    %78 = vector.shape_cast %77 : vector<16xf32> to vector<16x1xf32>
    %cst_32 = arith.constant 0.0322580636 : f32
    %79 = vector.broadcast %cst_32 : f32 to vector<16x1xf32>
    %80 = arith.mulf %78, %79 : vector<16x1xf32>
    %81 = math.sqrt %80 : vector<16x1xf32>
    %cst_33 = arith.constant 9.99999997E-7 : f32
    %82 = vector.broadcast %cst_33 : f32 to vector<16x1xf32>
    %83 = arith.addf %81, %82 : vector<16x1xf32>
    %84 = tpu.reciprocal %83 {approx = true} : vector<16x1xf32> -> vector<16x1xf32>
    %85 = arith.mulf %83, %84 : vector<16x1xf32>
    %cst_34 = arith.constant 2.000000e+00 : f32
    %86 = vector.broadcast %cst_34 : f32 to vector<16x1xf32>
    %87 = arith.subf %86, %85 : vector<16x1xf32>
    %88 = arith.mulf %84, %87 : vector<16x1xf32>
    %89 = vector.broadcast %4 : vector<1x32xf32> to vector<16x32xf32>
    %90 = arith.mulf %89, %75 : vector<16x32xf32>
    %91 = vector.broadcast %88 : vector<16x1xf32> to vector<16x32xf32>
    %92 = arith.mulf %90, %91 : vector<16x32xf32>
    %93 = vector.broadcast %5 : vector<1x32xf32> to vector<16x32xf32>
    %94 = arith.addf %92, %93 : vector<16x32xf32>
    %c0_35 = arith.constant 0 : index
    %c0_36 = arith.constant 0 : index
    %95 = vector.load %arg4[%c0_35, %c0_36] : memref<32x64xf32, #tpu.memory_space<vmem>>, vector<32x64xf32>
    %cst_37 = arith.constant dense<0.000000e+00> : vector<16x64xf32>
    %96 = tpu.matmul %94, %95, %cst_37 {dimension_numbers = #tpu.dot_dimension_numbers<[1], [0], [0], [1], [0, 0, 1, 1], [], []>} : vector<16x32xf32>, vector<32x64xf32>, vector<16x64xf32> -> vector<16x64xf32>
    %97 = vector.broadcast %8 : vector<1x64xf32> to vector<16x64xf32>
    %98 = arith.addf %96, %97 : vector<16x64xf32>
    %cst_38 = arith.constant 0.000000e+00 : f32
    %99 = vector.broadcast %cst_38 : f32 to vector<16x64xf32>
    %100 = arith.maximumf %98, %99 : vector<16x64xf32>
    %c0_39 = arith.constant 0 : index
    %c0_40 = arith.constant 0 : index
    %101 = vector.load %arg5[%c0_39, %c0_40] : memref<64x32xf32, #tpu.memory_space<vmem>>, vector<64x32xf32>
    %cst_41 = arith.constant dense<0.000000e+00> : vector<16x32xf32>
    %102 = tpu.matmul %100, %101, %cst_41 {dimension_numbers = #tpu.dot_dimension_numbers<[1], [0], [0], [1], [0, 0, 1, 1], [], []>} : vector<16x64xf32>, vector<64x32xf32>, vector<16x32xf32> -> vector<16x32xf32>
    %103 = vector.broadcast %6 : vector<1x32xf32> to vector<16x32xf32>
    %104 = arith.addf %102, %103 : vector<16x32xf32>
    %105 = arith.addf %69, %104 : vector<16x32xf32>
    %c0_42 = arith.constant 0 : index
    %c0_43 = arith.constant 0 : index
    %106 = vector.load %arg8[%c0_42, %c0_43] : memref<16x32xf32, #tpu.memory_space<vmem>>, vector<16x32xf32>
    tpu.vector_store %arg8[%c0_42, %c0_43], %105 {strides = array<i32>} : memref<16x32xf32, #tpu.memory_space<vmem>>, vector<16x32xf32>,
    return
  }
}

</mosaic_0001>

<bundles_post_ra>
// kernel: tpu_custom_call.1
= control target key start
LH: loop header
LB: loop body
LE: loop exit
PB: predicated region body
PF: predicated region fallthrough
CT: control target
= control target key end

     0   :  { %13 = vsyncpa [#allocation3], 0  ;;  %s3498_s0 = inlined_call_operand.hbm [shape: f32[16,32], index: 0, kind: input, shape index: {}]   ;;  %s3499_s1 = inlined_call_operand.hbm [shape: f32[16,16], index: 1, kind: input, shape index: {}]   ;;  %s3500_s2 = inlined_call_operand.vmem [shape: f32[32,96], index: 2, kind: input, shape index: {}]   ;;  %s3501_s3 = inlined_call_operand.vmem [shape: f32[32,32], index: 3, kind: input, shape index: {}]   ;;  %s3502_s4 = inlined_call_operand.vmem [shape: f32[32,64], index: 4, kind: input, shape index: {}]   ;;  %s3503_s5 = inlined_call_operand.vmem [shape: f32[64,32], index: 5, kind: input, shape index: {}]   ;;  %s3504_s6 = inlined_call_operand.vmem [shape: f32[8,32], index: 6, kind: input, shape index: {}]   ;;  %s3505_s7 = inlined_call_operand.vmem [shape: f32[8,96], index: 7, kind: input, shape index: {}]   ;;  %s3506_s8 = inlined_call_operand.hbm [shape: f32[16,32], index: 8, kind: output, shape index: {}]  }
   0x1   :  { %14 = vsyncpa [#allocation6], 0 }
   0x2   :  { %15 = vsyncpa [#allocation4], 0  ;;  %s2963_s27 = smov [#allocation2]   ;;  %s2891_s9 = scalar_lea.hbm %s3498_s0, 256 }
   0x3   :  { %s21_s28 = sshll.u32 %s2963_s27, 4  ;;  %p2892_p0 = scmp.ne.s32.totalorder %s3498_s0, %s2891_s9  ;;  %s22_s28 = int_to_ptr.vmem [resolvable:$true] %s21_s28 }
   0x4   :  { %p2895_p1 = scmp.lt.u32.totalorder %s2891_s9, %s3498_s0 }
   0x6   :  { %p2897_p2 = pnand %p2895_p1, %p2892_p0 }
   0x8   :  { %2900 = shalt.err (!%p2897_p2)
}
   0x9   :  { %s2901_s14 = scalar_lea.vmem %s22_s28, 256  ;;  %p2906_p4 = scmp.lt.s32.totalorder %s22_s28, %s22_s28 }
   0xa   :  { %p2902_p3 = scmp.ne.s32.totalorder %s22_s28, %s2901_s14  ;;  %p2907_p5 = scmp.lt.s32.totalorder %s2901_s14, %s2901_s14 }
   0xc   :  { %p2908_p6 = por %p2907_p5, %p2906_p4 }
   0xe   :  { %p2909_p7 = pnand %p2908_p6, %p2902_p3 }
  0x10   :  { %2912 = shalt.err (!%p2909_p7)
}
  0x11   :  { %s2964_s15 = smov 128   ;;  %s2965_s16 = smov 8  }
  0x12   :  { %27 = dma.hbm_to_vmem [thread:$0]  %s3498_s0, 256, %s22_s28, [#allocation3], %s2964_s15, %s2964_s15, %s2965_s16  }
  0x13   :  { %s2966_s19 = smov [#allocation5]   ;;  %s2913_s23 = scalar_lea.hbm %s3499_s1, 256 }
  0x14   :  { %s33_s20 = sshll.u32 %s2966_s19, 4  ;;  %p2914_p8 = scmp.ne.s32.totalorder %s3499_s1, %s2913_s23  ;;  %s34_s20 = int_to_ptr.vmem [resolvable:$true] %s33_s20 }
  0x15   :  { %p2917_p9 = scmp.lt.u32.totalorder %s2913_s23, %s3499_s1 }
  0x17   :  { %p2919_p10 = pnand %p2917_p9, %p2914_p8 }
  0x19   :  { %2922 = shalt.err (!%p2919_p10)
}
  0x1a   :  { %s2923_s29 = scalar_lea.vmem %s34_s20, 256  ;;  %p2928_p12 = scmp.lt.s32.totalorder %s34_s20, %s34_s20 }
  0x1b   :  { %p2924_p11 = scmp.ne.s32.totalorder %s34_s20, %s2923_s29  ;;  %p2929_p13 = scmp.lt.s32.totalorder %s2923_s29, %s2923_s29 }
  0x1d   :  { %p2930_p0 = por %p2929_p13, %p2928_p12 }
  0x1f   :  { %p2931_p1 = pnand %p2930_p0, %p2924_p11 }
  0x21   :  { %2934 = shalt.err (!%p2931_p1)
}
  0x22   :  { %39 = dma.hbm_to_vmem [thread:$0]  %s3499_s1, 256, %s34_s20, [#allocation6], %s2964_s15, %s2964_s15, %s2965_s16  }
  0x23   :  { %2957 = dma.done.wait [#allocation3], 256  }
  0x24   :  { %2958 = vsyncadd [#allocation3], 4294967040 }
  0x25   :  { %2959 = dma.done.wait [#allocation6], 256  }
  0x26   :  { %2960 = vsyncadd [#allocation6], 4294967040  ;;  %vm68_vm0 = vcmask 261120   ;;  %v58_v0 = vld [vmem:[#allocation2] sm:$0xff]  ;;  %v59_v1 = vld [vmem:[#allocation2 + $0x8] sm:$0xff]  ;;  %s2967_s22 = smov 120   ;;  %v241_v59 = vlaneseq }
  0x27   :  { %v69_v2 = vsel %vm68_vm0, %v58_v0, 0.0  ;;  %v72_v3 = vsel %vm68_vm0, %v59_v1, 0.0  ;;  %v127_v14 = vld [vmem:[%s3500_s2] sm:$0xff]  ;;  %v128_v15 = vld [vmem:[%s3500_s2 + $0x8] sm:$0xff]  ;;  %v129_v16 = vld [vmem:[%s3500_s2 + $0x10] sm:$0xff]  ;;  %s2968_s23 = smov 112  }
  0x28   :  { %70 = vadd.xlane.f32.xlu0 %v69_v2  ;;  %v2747_v17 = vpack.c.bf16 %v128_v15, %v127_v14  ;;  %v130_v18 = vld [vmem:[%s3500_s2 + $0x18] sm:$0xff]  ;;  %v2523_v38 = vld [vmem:[%s3504_s6] ss:$0 sm:$0xff]  ;;  %v2524_v44 = vld [vmem:[%s3504_s6 + $0x1] ss:$0 sm:$0xff]  ;;  %s2969_s24 = smov 104  }
  0x29   :  { %v2751_v19 = vpack.c.bf16 %v130_v18, %v129_v16  ;;  %v2525_v52 = vld [vmem:[%s3505_s7] ss:$0 sm:$0xff]  ;;  %s2970_s25 = smov 96   ;;  %v2971_v57 = vmov 1983009808   ;;  %vm1102_vm5 = vcmask 64512  }
  0x2a   :  { %2748 = vmatprep.subr.bf16.mxu1 %v2747_v17  ;;  %v239_v58 = vunpack.c.l.s4 %v2971_v57  ;;  %v2972_v62 = vmov 1934713408   ;;  %vm3217_vm6 = vmpackc.low %vm1102_vm5, %vm1102_vm5  ;;  %vm1451_vm7 = vcmask 130048   ;;  %s2973_s26 = smov 64   ;;  %s2974_s11 = smov 16   ;;  %vm2164_vm8 = vcmask 195584  }
  0x2b   :  { %2750 = vmatpush3.bf16.msra.mxu1 %v2747_v17  ;;  %v271_v63 = vunpack.c.l.s4 %v2972_v62  ;;  %vm2419_vm13 = vcmask 523264  }
  0x2c   :  { %73 = vadd.xlane.f32.xlu0 %v72_v3  ;;  %2752 = vmatprep.subr.bf16.mxu1 %v2751_v19 }
  0x2f   :  { %2754 = vmatpush3.bf16.msra.mxu1 %v2751_v19 }
  0xb5   :  { %v71_v4 = vpop.xlane.xlu0 %70 }
  0xb6   :  { %v75_v5 = vmul.f32 0.03125, %v71_v4  ;;  %v272_v4 = vunpack.c.0.s8 %v271_v63 }
  0xb8   :  { %v77_v6 = vsub.f32 %v58_v0, %v75_v5  ;;  %v240_v0 = vunpack.c.0.s8 %v239_v58 }
  0xb9   :  { %v74_v7 = vpop.xlane.xlu0 %73 }
  0xba   :  { %v76_v8 = vmul.f32 0.03125, %v74_v7  ;;  %v79_v9 = vmul.f32 %v77_v6, %v77_v6  ;;  %v117_v41 = vmul.f32 %v2523_v38, %v77_v6 }
  0xbc   :  { %v78_v10 = vsub.f32 %v59_v1, %v76_v8  ;;  %v81_v11 = vsel %vm68_vm0, %v79_v9, 0.0  ;;  %v242_v1 = vshrl.u32 %v241_v59, 7 }
  0xbd   :  { %82 = vadd.xlane.f32.xlu1 %v81_v11 }
  0xbe   :  { %v80_v12 = vmul.f32 %v78_v10, %v78_v10  ;;  %v118_v47 = vmul.f32 %v2523_v38, %v78_v10  ;;  %v3107_v5 = vsub.s32 %v240_v0, %v242_v1  ;;  %v3121_v11 = vsub.s32 %v272_v4, %v242_v1 }
  0xc0   :  { %v84_v13 = vsel %vm68_vm0, %v80_v12, 0.0 }
  0xc1   :  { %85 = vadd.xlane.f32.xlu1 %v84_v13 }
 0x14a   :  { %v83_v20 = vpop.xlane.xlu1 %82 }
 0x14b   :  { %v87_v21 = vmul.f32 0.032258064, %v83_v20 }
 0x14d   :  { %2841 = vrsqrt.f32 %v87_v21  ;;  %vm91_vm1 = vcmp.eq.f32.partialorder %v87_v21, inf  ;;  %v94_v26 = vand.u32 2147483648, %v87_v21  ;;  %vm93_vm2 = vcmp.eq.f32.partialorder %v87_v21, 0.0 }
 0x14e   :  { %v86_v22 = vpop.xlane.xlu1 %85 }
 0x14f   :  { %v88_v23 = vmul.f32 0.032258064, %v86_v22 }
 0x151   :  { %2843 = vrsqrt.f32 %v88_v23  ;;  %vm98_vm3 = vcmp.eq.f32.partialorder %v88_v23, inf  ;;  %v101_v32 = vand.u32 2147483648, %v88_v23  ;;  %vm100_vm4 = vcmp.eq.f32.partialorder %v88_v23, 0.0 }
 0x157   :  { %v2842_v24 = vpop.eup %2841 }
 0x158   :  { %v90_v25 = vmul.f32 %v2842_v24, %v87_v21 }
 0x15a   :  { %v92_v27 = vsel %vm91_vm1, %v87_v21, %v90_v25 }
 0x15b   :  { %v2844_v28 = vpop.eup %2843  ;;  %v95_v29 = vsel %vm93_vm2, %v94_v26, %v92_v27 }
 0x15c   :  { %v97_v30 = vmul.f32 %v2844_v28, %v88_v23  ;;  %v103_v31 = vadd.f32 1e-06, %v95_v29 }
 0x15e   :  { %v99_v33 = vsel %vm98_vm3, %v88_v23, %v97_v30  ;;  %2845 = vrcp.f32 %v103_v31 }
 0x15f   :  { %v102_v34 = vsel %vm100_vm4, %v101_v32, %v99_v33 }
 0x160   :  { %v104_v35 = vadd.f32 1e-06, %v102_v34 }
 0x162   :  { %2847 = vrcp.f32 %v104_v35 }
 0x168   :  { %v2846_v36 = vpop.eup %2845 }
 0x169   :  { %v107_v37 = vmul.f32 %v2846_v36, %v103_v31 }
 0x16b   :  { %v109_v39 = vsub.f32 2.0, %v107_v37 }
 0x16c   :  { %v2848_v40 = vpop.eup %2847 }
 0x16d   :  { %v108_v42 = vmul.f32 %v2848_v40, %v104_v35  ;;  %v111_v43 = vmul.f32 %v2846_v36, %v109_v39 }
 0x16f   :  { %v110_v45 = vsub.f32 2.0, %v108_v42  ;;  %v119_v46 = vmul.f32 %v117_v41, %v111_v43 }
 0x171   :  { %v112_v48 = vmul.f32 %v2848_v40, %v110_v45  ;;  %v125_v49 = vadd.f32 %v2524_v44, %v119_v46 }
 0x173   :  { %v120_v50 = vmul.f32 %v118_v47, %v112_v48  ;;  %2647 = vmatprep.mubr.msk.f32.mxu1 %vm68_vm0, %v125_v49 }
 0x175   :  { %v126_v51 = vadd.f32 %v2524_v44, %v120_v50 }
 0x177   :  { %2648 = vmatmul.mubr.msk.f32.vlgmr.msra.gmra.mrb[0].mxu1 %vm68_vm0, %v126_v51 }
 0x24a   :  { %v2649_v53 = vpop.f32.mrb[0].mxu1 }
 0x24b   :  { %v3079_v54 = vadd.f32 %v2649_v53, %v2525_v52  ;;  %v207_v55 = vpop.f32.mrb[1].mxu1 }
 0x24c   :  { %v3081_v56 = vadd.f32 %v2525_v52, %v207_v55 }
 0x24d   :  { %220 = vrot.lane.b32.xlu1 %v3079_v54, %s2967_s22 }
 0x24e   :  { %218 = vrot.lane.b32.xlu0 %v3081_v56, %s2967_s22 }
 0x251   :  { %226 = vrot.lane.b32.xlu1 %v3079_v54, %s2968_s23 }
 0x252   :  { %230 = vrot.lane.b32.xlu0 %v3081_v56, %s2969_s24 }
 0x255   :  { %224 = vrot.lane.b32.xlu1 %v3081_v56, %s2968_s23 }
 0x256   :  { %508 = vrot.lane.b32.xlu0 %v3081_v56, %s2970_s25 }
 0x259   :  { %232 = vrot.lane.b32.xlu1 %v3079_v54, %s2969_s24 }
 0x25d   :  { %510 = vrot.lane.b32.xlu1 %v3079_v54, %s2970_s25 }
 0x2bf   :  { %v3093_v60 = vpop.permute.xlu1 %220 }
 0x2c0   :  { %514 = vrot.lane.b32.xlu1 %v3093_v60, %s2970_s25  ;;  %v3097_v61 = vpop.permute.xlu0 %218 }
 0x2c1   :  { %512 = vrot.lane.b32.xlu0 %v3097_v61, %s2970_s25 }
 0x2c3   :  { %v3101_v2 = vpop.permute.xlu1 %226 }
 0x2c4   :  { %518 = vrot.lane.b32.xlu1 %v3101_v2, %s2970_s25  ;;  %v3105_v3 = vpop.permute.xlu0 %230  ;;  %v304_v47 = vcombine.low %v3079_v54, %v3101_v2  ;;  %v305_v48 = vcombine.high %v3079_v54, %v3101_v2 }
 0x2c5   :  { %v252_v6 = vcombine.low %v3097_v61, %v3105_v3  ;;  %v253_v7 = vcombine.high %v3097_v61, %v3105_v3 }
 0x2c6   :  { %v312_v52 = vrot.slane %v304_v47, %v3107_v5  ;;  %v319_v53 = vrot.slane %v305_v48, %v3107_v5 }
 0x2c7   :  { %v3113_v8 = vpop.permute.xlu1 %224  ;;  %v260_v12 = vrot.slane %v252_v6, %v3107_v5  ;;  %v267_v13 = vrot.slane %v253_v7, %v3107_v5 }
 0x2c8   :  { %v236_v9 = vcombine.low %v3081_v56, %v3113_v8  ;;  %v237_v10 = vcombine.high %v3081_v56, %v3113_v8  ;;  %516 = vrot.lane.b32.xlu0 %v3113_v8, %s2970_s25  ;;  %v509_v55 = vpop.permute.xlu0 %508 }
 0x2ca   :  { %v244_v14 = vrot.slane %v236_v9, %v3107_v5  ;;  %v251_v15 = vrot.slane %v237_v10, %v3107_v5 }
 0x2cb   :  { %v3127_v16 = vpop.permute.xlu1 %232 }
 0x2cc   :  { %v268_v17 = vcombine.low %v244_v14, %v260_v12  ;;  %v269_v18 = vcombine.high %v244_v14, %v260_v12  ;;  %v284_v19 = vcombine.low %v251_v15, %v267_v13  ;;  %v285_v20 = vcombine.high %v251_v15, %v267_v13  ;;  %522 = vrot.lane.b32.xlu1 %v3127_v16, %s2970_s25 }
 0x2cd   :  { %520 = vrot.lane.b32.xlu0 %v3105_v3, %s2970_s25  ;;  %v320_v45 = vcombine.low %v3093_v60, %v3127_v16  ;;  %v321_v46 = vcombine.high %v3093_v60, %v3127_v16 }
 0x2ce   :  { %v276_v21 = vrot.slane %v268_v17, %v3121_v11  ;;  %v283_v22 = vrot.slane %v269_v18, %v3121_v11  ;;  %v292_v23 = vrot.slane %v284_v19, %v3121_v11  ;;  %v299_v24 = vrot.slane %v285_v20, %v3121_v11 }
 0x2cf   :  { %v328_v49 = vrot.slane %v320_v45, %v3107_v5  ;;  %v335_v50 = vrot.slane %v321_v46, %v3107_v5  ;;  %v511_v51 = vpop.permute.xlu1 %510 }
 0x2d0   :  { %v372_v25 = vcombine.low %v276_v21, %v283_v22  ;;  %v2528_v26 = vcombine.high %v276_v21, %v283_v22  ;;  %v388_v27 = vcombine.low %v292_v23, %v299_v24  ;;  %v2529_v28 = vcombine.high %v292_v23, %v299_v24 }
 0x2d1   :  { %v336_v57 = vcombine.low %v312_v52, %v328_v49  ;;  %v337_v58 = vcombine.high %v312_v52, %v328_v49  ;;  %v352_v59 = vcombine.low %v319_v53, %v335_v50  ;;  %v353_v62 = vcombine.high %v319_v53, %v335_v50 }
 0x2d2   :  { %v379_v29 = vrot.slane %v372_v25, %v3107_v5  ;;  %v387_v30 = vrot.slane %v2528_v26, %v3107_v5  ;;  %v395_v31 = vrot.slane %v388_v27, %v3107_v5  ;;  %v403_v32 = vrot.slane %v2529_v28, %v3107_v5 }
 0x2d3   :  { %v344_v1 = vrot.slane %v336_v57, %v3121_v11  ;;  %v351_v4 = vrot.slane %v337_v58, %v3121_v11  ;;  %v360_v6 = vrot.slane %v352_v59, %v3121_v11  ;;  %v367_v7 = vrot.slane %v353_v62, %v3121_v11 }
 0x2d4   :  { %v404_v33 = vcombine.low %v379_v29, %v387_v30  ;;  %v420_v34 = vcombine.low %v395_v31, %v403_v32  ;;  %v405_v35 = vcombine.high %v379_v29, %v387_v30  ;;  %v421_v36 = vcombine.high %v395_v31, %v403_v32 }
 0x2d5   :  { %v440_v12 = vcombine.low %v344_v1, %v351_v4  ;;  %v2530_v13 = vcombine.high %v344_v1, %v351_v4  ;;  %v456_v14 = vcombine.low %v360_v6, %v367_v7  ;;  %v2531_v15 = vcombine.high %v360_v6, %v367_v7 }
 0x2d6   :  { %v412_v37 = vrot.slane %v404_v33, %v3121_v11  ;;  %v428_v38 = vrot.slane %v420_v34, %v3121_v11  ;;  %v3144_v39 = vrot.slane %v405_v35, %v3121_v11  ;;  %v3147_v40 = vrot.slane %v421_v36, %v3121_v11 }
 0x2d7   :  { %v3172_v22 = vrot.slane %v440_v12, %v3107_v5  ;;  %v3175_v23 = vrot.slane %v2530_v13, %v3107_v5  ;;  %v3178_v27 = vrot.slane %v456_v14, %v3107_v5  ;;  %v3181_v28 = vrot.slane %v2531_v15, %v3107_v5 }
 0x2d8   :  { %v436_v41 = vcombine.low %v412_v37, %v428_v38  ;;  %v437_v42 = vcombine.high %v412_v37, %v428_v38  ;;  %v438_v43 = vcombine.low %v3144_v39, %v3147_v40  ;;  %v439_v44 = vcombine.high %v3144_v39, %v3147_v40 }
 0x2da   :  { %2654 = vmatprep.mubr.msk.f32.mxu1 %vm1102_vm5, %v436_v41  ;;  %2661 = vmatprep.mubr.msk.f32.mxu0 %vm1102_vm5, %v437_v42 }
 0x332   :  { %v515_v63 = vpop.permute.xlu1 %514 }
 0x333   :  { %v513_v0 = vpop.permute.xlu0 %512 }
 0x336   :  { %v519_v9 = vpop.permute.xlu1 %518 }
 0x337   :  { %v600_v17 = vcombine.low %v511_v51, %v519_v9  ;;  %v601_v18 = vcombine.high %v511_v51, %v519_v9 }
 0x339   :  { %v608_v31 = vrot.slane %v600_v17, %v3107_v5  ;;  %v615_v32 = vrot.slane %v601_v18, %v3107_v5 }
 0x33a   :  { %v517_v10 = vpop.permute.xlu0 %516 }
 0x33b   :  { %v532_v19 = vcombine.low %v509_v55, %v517_v10  ;;  %v533_v20 = vcombine.high %v509_v55, %v517_v10 }
 0x33d   :  { %v540_v35 = vrot.slane %v532_v19, %v3107_v5  ;;  %v547_v36 = vrot.slane %v533_v20, %v3107_v5 }
 0x33e   :  { %v523_v21 = vpop.permute.xlu1 %522 }
 0x33f   :  { %v616_v24 = vcombine.low %v515_v63, %v523_v21  ;;  %v617_v25 = vcombine.high %v515_v63, %v523_v21  ;;  %v521_v26 = vpop.permute.xlu0 %520 }
 0x340   :  { %v548_v29 = vcombine.low %v513_v0, %v521_v26  ;;  %v549_v30 = vcombine.high %v513_v0, %v521_v26 }
 0x341   :  { %v624_v33 = vrot.slane %v616_v24, %v3107_v5  ;;  %v631_v34 = vrot.slane %v617_v25, %v3107_v5 }
 0x342   :  { %v556_v37 = vrot.slane %v548_v29, %v3107_v5  ;;  %v563_v38 = vrot.slane %v549_v30, %v3107_v5 }
 0x343   :  { %v632_v41 = vcombine.low %v608_v31, %v624_v33  ;;  %v633_v42 = vcombine.high %v608_v31, %v624_v33  ;;  %v648_v45 = vcombine.low %v615_v32, %v631_v34  ;;  %v649_v46 = vcombine.high %v615_v32, %v631_v34 }
 0x344   :  { %v564_v47 = vcombine.low %v540_v35, %v556_v37  ;;  %v565_v48 = vcombine.high %v540_v35, %v556_v37  ;;  %v580_v49 = vcombine.low %v547_v36, %v563_v38  ;;  %v581_v50 = vcombine.high %v547_v36, %v563_v38 }
 0x345   :  { %v640_v51 = vrot.slane %v632_v41, %v3121_v11  ;;  %v647_v52 = vrot.slane %v633_v42, %v3121_v11  ;;  %v656_v53 = vrot.slane %v648_v45, %v3121_v11  ;;  %v663_v55 = vrot.slane %v649_v46, %v3121_v11 }
 0x346   :  { %v572_v57 = vrot.slane %v564_v47, %v3121_v11  ;;  %v579_v58 = vrot.slane %v565_v48, %v3121_v11  ;;  %v588_v59 = vrot.slane %v580_v49, %v3121_v11  ;;  %v595_v62 = vrot.slane %v581_v50, %v3121_v11 }
 0x347   :  { %v736_v63 = vcombine.low %v640_v51, %v647_v52  ;;  %v2534_v0 = vcombine.high %v640_v51, %v647_v52  ;;  %v752_v1 = vcombine.low %v656_v53, %v663_v55  ;;  %v2535_v4 = vcombine.high %v656_v53, %v663_v55 }
 0x348   :  { %v668_v6 = vcombine.low %v572_v57, %v579_v58  ;;  %v2532_v7 = vcombine.high %v572_v57, %v579_v58  ;;  %v684_v9 = vcombine.low %v588_v59, %v595_v62  ;;  %v2533_v10 = vcombine.high %v588_v59, %v595_v62 }
 0x349   :  { %v743_v12 = vrot.slane %v736_v63, %v3107_v5  ;;  %v751_v13 = vrot.slane %v2534_v0, %v3107_v5  ;;  %v759_v14 = vrot.slane %v752_v1, %v3107_v5  ;;  %v767_v15 = vrot.slane %v2535_v4, %v3107_v5 }
 0x34a   :  { %v675_v17 = vrot.slane %v668_v6, %v3107_v5  ;;  %v683_v18 = vrot.slane %v2532_v7, %v3107_v5  ;;  %v691_v19 = vrot.slane %v684_v9, %v3107_v5  ;;  %v699_v20 = vrot.slane %v2533_v10, %v3107_v5  ;;  %v1101_v10 = vld [vmem:[#allocation5 + $0x8] sm:$0xff] }
 0x34b   :  { %v768_v21 = vcombine.low %v743_v12, %v751_v13  ;;  %v784_v24 = vcombine.low %v759_v14, %v767_v15  ;;  %v769_v25 = vcombine.high %v743_v12, %v751_v13  ;;  %v785_v26 = vcombine.high %v759_v14, %v767_v15  ;;  %v1100_v13 = vld [vmem:[#allocation5] sm:$0xff] }
 0x34c   :  { %v700_v29 = vcombine.low %v675_v17, %v683_v18  ;;  %v716_v30 = vcombine.low %v691_v19, %v699_v20  ;;  %v701_v31 = vcombine.high %v675_v17, %v683_v18  ;;  %v717_v32 = vcombine.high %v691_v19, %v699_v20 }
 0x34d   :  { %v776_v33 = vrot.slane %v768_v21, %v3121_v11  ;;  %v792_v34 = vrot.slane %v784_v24, %v3121_v11  ;;  %v783_v35 = vrot.slane %v769_v25, %v3121_v11  ;;  %v799_v36 = vrot.slane %v785_v26, %v3121_v11 }
 0x34e   :  { %v708_v37 = vrot.slane %v700_v29, %v3121_v11  ;;  %v724_v38 = vrot.slane %v716_v30, %v3121_v11  ;;  %v715_v41 = vrot.slane %v701_v31, %v3121_v11  ;;  %v731_v42 = vrot.slane %v717_v32, %v3121_v11 }
 0x34f   :  { %v800_v45 = vcombine.low %v776_v33, %v792_v34  ;;  %v801_v46 = vcombine.high %v776_v33, %v792_v34  ;;  %v802_v47 = vcombine.low %v783_v35, %v799_v36  ;;  %v803_v48 = vcombine.high %v783_v35, %v799_v36 }
 0x350   :  { %v732_v49 = vcombine.low %v708_v37, %v724_v38  ;;  %v733_v50 = vcombine.high %v708_v37, %v724_v38  ;;  %v734_v51 = vcombine.low %v715_v41, %v731_v42  ;;  %v735_v52 = vcombine.high %v715_v41, %v731_v42 }
 0x351   :  { %v472_v58 = vcombine.low %v3172_v22, %v3175_v23  ;;  %v488_v59 = vcombine.low %v3178_v27, %v3181_v28  ;;  %v473_v7 = vcombine.high %v3172_v22, %v3175_v23  ;;  %v489_v9 = vcombine.high %v3178_v27, %v3181_v28 }
 0x352   :  { %v2755_v55 = vpack.c.bf16 %v800_v45, %v732_v49  ;;  %v2761_v57 = vpack.c.bf16 %v801_v46, %v733_v50  ;;  %v2767_v62 = vpack.c.bf16 %v802_v47, %v734_v51  ;;  %v2773_v63 = vpack.c.bf16 %v803_v48, %v735_v52 }
 0x353   :  { %v480_v0 = vrot.slane %v472_v58, %v3121_v11  ;;  %v496_v1 = vrot.slane %v488_v59, %v3121_v11  ;;  %v487_v22 = vrot.slane %v473_v7, %v3121_v11  ;;  %v503_v23 = vrot.slane %v489_v9, %v3121_v11 }
 0x354   :  { %2757 = vmatprep.subr.msk.bf16.mxu1 %vm3217_vm6, %v2755_v55  ;;  %2763 = vmatprep.subr.msk.bf16.mxu0 %vm3217_vm6, %v2761_v57 }
 0x355   :  { %2760 = vmatpush3.bf16.xpose.msk.msra.mxu1 %vm3217_vm6, %v2755_v55  ;;  %2766 = vmatpush3.bf16.xpose.msk.msra.mxu0 %vm3217_vm6, %v2761_v57  ;;  %v504_v4 = vcombine.low %v480_v0, %v496_v1  ;;  %v505_v6 = vcombine.high %v480_v0, %v496_v1  ;;  %v506_v27 = vcombine.low %v487_v22, %v503_v23 }
 0x356   :  { %2769 = vmatprep.subr.msk.bf16.mxu1 %vm3217_vm6, %v2767_v62  ;;  %2775 = vmatprep.subr.msk.bf16.mxu0 %vm3217_vm6, %v2773_v63  ;;  %v507_v28 = vcombine.high %v487_v22, %v503_v23 }
 0x35c   :  { %2655 = vmatmul.mubr.msk.f32.vlgmr.msra.gmra.mrb[2].mxu1 %vm1102_vm5, %v504_v4  ;;  %2662 = vmatmul.mubr.msk.f32.vlgmr.msra.gmra.mrb[0].mxu0 %vm1102_vm5, %v505_v6 }
 0x35d   :  { %2772 = vmatpush3.bf16.xpose.msk.msra.mxu1 %vm3217_vm6, %v2767_v62  ;;  %2668 = vmatprep.mubr.msk.f32.mxu1 %vm1102_vm5, %v438_v43 }
 0x35e   :  { %2778 = vmatpush3.bf16.xpose.msk.msra.mxu0 %vm3217_vm6, %v2773_v63  ;;  %2675 = vmatprep.mubr.msk.f32.mxu0 %vm1102_vm5, %v439_v44 }
 0x364   :  { %2669 = vmatmul.mubr.msk.f32.vlgmr.msra.gmra.mrb[4].mxu1 %vm1102_vm5, %v506_v27 }
 0x365   :  { %2676 = vmatmul.mubr.msk.f32.vlgmr.msra.gmra.mrb[2].mxu0 %vm1102_vm5, %v507_v28 }
 0x42f   :  { %v2656_v43 = vpop.f32.mrb[2].mxu1  ;;  %v2663_v12 = vpop.f32.mrb[0].mxu0 }
 0x430   :  { %v1187_v14 = vadd.f32 %v2656_v43, %v1101_v10  ;;  %v1274_v15 = vadd.f32 %v2663_v12, %v1101_v10  ;;  %v1181_v39 = vpop.f32.mrb[3].mxu1  ;;  %v1268_v40 = vpop.f32.mrb[1].mxu0 }
 0x431   :  { %v1182_v44 = vadd.f32 %v1181_v39, %v1100_v13  ;;  %v1269_v19 = vadd.f32 %v1268_v40, %v1100_v13 }
 0x432   :  { %v1461_v17 = vsel %vm1451_vm7, %v1274_v15, -inf  ;;  %v1455_v18 = vsel %vm1451_vm7, %v1187_v14, -inf }
 0x433   :  { %1462 = vmax.xlane.f32.xlu0 %v1461_v17  ;;  %1456 = vmax.xlane.f32.xlu1 %v1455_v18  ;;  %v1452_v20 = vsel %vm1451_vm7, %v1182_v44, -inf  ;;  %v1458_v31 = vsel %vm1451_vm7, %v1269_v19, -inf }
 0x437   :  { %v2670_v21 = vpop.f32.mrb[4].mxu1  ;;  %1453 = vmax.xlane.f32.xlu0 %v1452_v20 }
 0x438   :  { %v2677_v24 = vpop.f32.mrb[2].mxu0  ;;  %v1355_v25 = vpop.f32.mrb[5].mxu1  ;;  %v1361_v34 = vadd.f32 %v2670_v21, %v1101_v10 }
 0x439   :  { %v1442_v26 = vpop.f32.mrb[3].mxu0  ;;  %v1356_v29 = vadd.f32 %v1355_v25, %v1100_v13  ;;  %v1448_v32 = vadd.f32 %v2677_v24, %v1101_v10 }
 0x43a   :  { %v1443_v30 = vadd.f32 %v1442_v26, %v1100_v13  ;;  %v1467_v37 = vsel %vm1451_vm7, %v1361_v34, -inf }
 0x43b   :  { %1459 = vmax.xlane.f32.xlu0 %v1458_v31  ;;  %v1464_v35 = vsel %vm1451_vm7, %v1356_v29, -inf  ;;  %v1473_v36 = vsel %vm1451_vm7, %v1448_v32, -inf }
 0x43c   :  { %v1470_v33 = vsel %vm1451_vm7, %v1443_v30, -inf }
 0x43d   :  { %1471 = vmax.xlane.f32.xlu1 %v1470_v33 }
 0x43f   :  { %1465 = vmax.xlane.f32.xlu0 %v1464_v35 }
 0x441   :  { %1474 = vmax.xlane.f32.xlu1 %v1473_v36 }
 0x443   :  { %1468 = vmax.xlane.f32.xlu0 %v1467_v37 }
 0x452   :  { %806 = vrot.lane.b32.xlu1 %v3079_v54, %s2973_s26 }
 0x456   :  { %808 = vrot.lane.b32.xlu1 %v3097_v61, %s2973_s26 }
 0x459   :  { %804 = vrot.lane.b32.xlu0 %v3081_v56, %s2973_s26 }
 0x45a   :  { %810 = vrot.lane.b32.xlu1 %v3093_v60, %s2973_s26 }
 0x45d   :  { %812 = vrot.lane.b32.xlu0 %v3113_v8, %s2973_s26 }
 0x45e   :  { %814 = vrot.lane.b32.xlu1 %v3101_v2, %s2973_s26 }
 0x461   :  { %816 = vrot.lane.b32.xlu0 %v3105_v3, %s2973_s26 }
 0x462   :  { %818 = vrot.lane.b32.xlu1 %v3127_v16, %s2973_s26 }
 0x4c0   :  { %v1463_v38 = vpop.xlane.xlu0 %1462  ;;  %v1457_v41 = vpop.xlane.xlu1 %1456 }
 0x4c1   :  { %v1479_v42 = vsub.f32 %v1274_v15, %v1463_v38  ;;  %v1477_v45 = vsub.f32 %v1187_v14, %v1457_v41 }
 0x4c3   :  { %v1486_v46 = vmul.f32 1.442695, %v1477_v45  ;;  %v1490_v54 = vmul.f32 1.442695, %v1479_v42 }
 0x4c4   :  { %v1454_v47 = vpop.xlane.xlu0 %1453 }
 0x4c5   :  { %v1476_v61 = vsub.f32 %v1182_v44, %v1454_v47  ;;  %2849 = vpow2.f32 %v1486_v46 }
 0x4c6   :  { %2851 = vpow2.f32 %v1490_v54 }
 0x4c7   :  { %v1484_v56 = vmul.f32 1.442695, %v1476_v61 }
 0x4c8   :  { %v1460_v60 = vpop.xlane.xlu0 %1459 }
 0x4c9   :  { %2853 = vpow2.f32 %v1484_v56  ;;  %v1478_v8 = vsub.f32 %v1269_v19, %v1460_v60 }
 0x4ca   :  { %v1472_v48 = vpop.xlane.xlu1 %1471 }
 0x4cb   :  { %v1488_v2 = vmul.f32 1.442695, %v1478_v8  ;;  %v1482_v49 = vsub.f32 %v1443_v30, %v1472_v48 }
 0x4cc   :  { %v1466_v3 = vpop.xlane.xlu0 %1465 }
 0x4cd   :  { %2855 = vpow2.f32 %v1488_v2  ;;  %v1480_v16 = vsub.f32 %v1356_v29, %v1466_v3  ;;  %v1496_v50 = vmul.f32 1.442695, %v1482_v49 }
 0x4ce   :  { %v1475_v51 = vpop.xlane.xlu1 %1474 }
 0x4cf   :  { %v1492_v52 = vmul.f32 1.442695, %v1480_v16  ;;  %v1483_v53 = vsub.f32 %v1448_v32, %v1475_v51  ;;  %v3277_v55 = vpop.eup %2849 }
 0x4d0   :  { %v1469_v57 = vpop.xlane.xlu0 %1468  ;;  %v1503_v62 = vsel %vm1451_vm7, %v3277_v55, 0.0  ;;  %v3281_v63 = vpop.eup %2851 }
 0x4d1   :  { %2857 = vpow2.f32 %v1492_v52  ;;  %v1498_v58 = vmul.f32 1.442695, %v1483_v53  ;;  %v1481_v59 = vsub.f32 %v1361_v34, %v1469_v57  ;;  %1504 = vadd.xlane.f32.xlu1 %v1503_v62  ;;  %v1509_v9 = vsel %vm1451_vm7, %v3281_v63, 0.0 }
 0x4d2   :  { %2859 = vpow2.f32 %v1496_v50  ;;  %v807_v0 = vpop.permute.xlu1 %806 }
 0x4d3   :  { %v3283_v1 = vpop.eup %2853  ;;  %2861 = vpow2.f32 %v1498_v58  ;;  %v1494_v4 = vmul.f32 1.442695, %v1481_v59 }
 0x4d4   :  { %v805_v6 = vpop.permute.xlu0 %804  ;;  %v1500_v7 = vsel %vm1451_vm7, %v3283_v1, 0.0 }
 0x4d5   :  { %1501 = vadd.xlane.f32.xlu0 %v1500_v7  ;;  %1510 = vadd.xlane.f32.xlu1 %v1509_v9  ;;  %2863 = vpow2.f32 %v1494_v4 }
 0x4d6   :  { %v809_v22 = vpop.permute.xlu1 %808 }
 0x4d7   :  { %v3289_v23 = vpop.eup %2855 }
 0x4d8   :  { %v813_v27 = vpop.permute.xlu0 %812  ;;  %v1506_v28 = vsel %vm1451_vm7, %v3289_v23, 0.0 }
 0x4d9   :  { %1507 = vadd.xlane.f32.xlu0 %v1506_v28  ;;  %v828_v12 = vcombine.low %v805_v6, %v813_v27  ;;  %v829_v13 = vcombine.high %v805_v6, %v813_v27 }
 0x4da   :  { %v811_v10 = vpop.permute.xlu1 %810 }
 0x4db   :  { %v3293_v43 = vpop.eup %2857  ;;  %v836_v20 = vrot.slane %v828_v12, %v3107_v5  ;;  %v843_v21 = vrot.slane %v829_v13, %v3107_v5 }
 0x4dc   :  { %v3295_v14 = vpop.eup %2859  ;;  %v817_v15 = vpop.permute.xlu0 %816  ;;  %v1512_v39 = vsel %vm1451_vm7, %v3293_v43, 0.0 }
 0x4dd   :  { %v3299_v40 = vpop.eup %2861  ;;  %v844_v44 = vcombine.low %v809_v22, %v817_v15  ;;  %v845_v17 = vcombine.high %v809_v22, %v817_v15  ;;  %1513 = vadd.xlane.f32.xlu0 %v1512_v39  ;;  %v1518_v26 = vsel %vm1451_vm7, %v3295_v14, 0.0 }
 0x4de   :  { %v815_v18 = vpop.permute.xlu1 %814  ;;  %v1521_v19 = vsel %vm1451_vm7, %v3299_v40, 0.0 }
 0x4df   :  { %v852_v24 = vrot.slane %v844_v44, %v3107_v5  ;;  %v859_v25 = vrot.slane %v845_v17, %v3107_v5  ;;  %1522 = vadd.xlane.f32.xlu1 %v1521_v19  ;;  %v3309_v29 = vpop.eup %2863  ;;  %v896_v34 = vcombine.low %v807_v0, %v815_v18  ;;  %v897_v35 = vcombine.high %v807_v0, %v815_v18 }
 0x4e0   :  { %v1515_v54 = vsel %vm1451_vm7, %v3309_v29, 0.0 }
 0x4e1   :  { %v860_v30 = vcombine.low %v836_v20, %v852_v24  ;;  %v861_v31 = vcombine.high %v836_v20, %v852_v24  ;;  %v876_v32 = vcombine.low %v843_v21, %v859_v25  ;;  %v877_v33 = vcombine.high %v843_v21, %v859_v25  ;;  %1519 = vadd.xlane.f32.xlu0 %v1518_v26 }
 0x4e2   :  { %v819_v36 = vpop.permute.xlu1 %818  ;;  %v904_v8 = vrot.slane %v896_v34, %v3107_v5  ;;  %v911_v48 = vrot.slane %v897_v35, %v3107_v5 }
 0x4e3   :  { %v868_v37 = vrot.slane %v860_v30, %v3121_v11  ;;  %v875_v38 = vrot.slane %v861_v31, %v3121_v11  ;;  %v884_v41 = vrot.slane %v876_v32, %v3121_v11  ;;  %v891_v42 = vrot.slane %v877_v33, %v3121_v11 }
 0x4e4   :  { %v912_v45 = vcombine.low %v811_v10, %v819_v36  ;;  %v913_v46 = vcombine.high %v811_v10, %v819_v36 }
 0x4e5   :  { %v964_v47 = vcombine.low %v868_v37, %v875_v38  ;;  %v2536_v61 = vcombine.high %v868_v37, %v875_v38  ;;  %v980_v56 = vcombine.low %v884_v41, %v891_v42  ;;  %v2537_v60 = vcombine.high %v884_v41, %v891_v42  ;;  %1516 = vadd.xlane.f32.xlu0 %v1515_v54 }
 0x4e6   :  { %v920_v2 = vrot.slane %v912_v45, %v3107_v5  ;;  %v927_v49 = vrot.slane %v913_v46, %v3107_v5 }
 0x4e7   :  { %v971_v3 = vrot.slane %v964_v47, %v3107_v5  ;;  %v979_v16 = vrot.slane %v2536_v61, %v3107_v5  ;;  %v987_v50 = vrot.slane %v980_v56, %v3107_v5  ;;  %v995_v51 = vrot.slane %v2537_v60, %v3107_v5 }
 0x4e8   :  { %v928_v52 = vcombine.low %v904_v8, %v920_v2  ;;  %v929_v53 = vcombine.high %v904_v8, %v920_v2  ;;  %v944_v57 = vcombine.low %v911_v48, %v927_v49  ;;  %v945_v58 = vcombine.high %v911_v48, %v927_v49 }
 0x4e9   :  { %v997_v59 = vcombine.high %v971_v3, %v979_v16  ;;  %v1013_v62 = vcombine.high %v987_v50, %v995_v51  ;;  %v996_v9 = vcombine.low %v971_v3, %v979_v16  ;;  %v1012_v22 = vcombine.low %v987_v50, %v995_v51 }
 0x4ea   :  { %v936_v0 = vrot.slane %v928_v52, %v3121_v11  ;;  %v943_v4 = vrot.slane %v929_v53, %v3121_v11  ;;  %v952_v6 = vrot.slane %v944_v57, %v3121_v11  ;;  %v959_v7 = vrot.slane %v945_v58, %v3121_v11 }
 0x4eb   :  { %v1011_v27 = vrot.slane %v997_v59, %v3121_v11  ;;  %v1027_v28 = vrot.slane %v1013_v62, %v3121_v11  ;;  %v1004_v20 = vrot.slane %v996_v9, %v3121_v11  ;;  %v1020_v21 = vrot.slane %v1012_v22, %v3121_v11 }
 0x4ec   :  { %v1032_v10 = vcombine.low %v936_v0, %v943_v4  ;;  %v2538_v12 = vcombine.high %v936_v0, %v943_v4  ;;  %v1048_v13 = vcombine.low %v952_v6, %v959_v7  ;;  %v2539_v15 = vcombine.high %v952_v6, %v959_v7 }
 0x4ed   :  { %v1031_v39 = vcombine.high %v1011_v27, %v1027_v28  ;;  %v1028_v35 = vcombine.low %v1004_v20, %v1020_v21  ;;  %v1030_v36 = vcombine.low %v1011_v27, %v1027_v28  ;;  %v1029_v54 = vcombine.high %v1004_v20, %v1020_v21 }
 0x4ee   :  { %v1039_v44 = vrot.slane %v1032_v10, %v3107_v5  ;;  %v1047_v17 = vrot.slane %v2538_v12, %v3107_v5  ;;  %v1055_v18 = vrot.slane %v1048_v13, %v3107_v5  ;;  %v1063_v19 = vrot.slane %v2539_v15, %v3107_v5 }
 0x4f0   :  { %v1064_v24 = vcombine.low %v1039_v44, %v1047_v17  ;;  %v1080_v25 = vcombine.low %v1055_v18, %v1063_v19  ;;  %v1065_v26 = vcombine.high %v1039_v44, %v1047_v17  ;;  %v1081_v30 = vcombine.high %v1055_v18, %v1063_v19 }
 0x4f2   :  { %v1072_v31 = vrot.slane %v1064_v24, %v3121_v11  ;;  %v1088_v32 = vrot.slane %v1080_v25, %v3121_v11  ;;  %v1079_v33 = vrot.slane %v1065_v26, %v3121_v11  ;;  %v1095_v34 = vrot.slane %v1081_v30, %v3121_v11 }
 0x4f4   :  { %v1096_v37 = vcombine.low %v1072_v31, %v1088_v32  ;;  %v1098_v38 = vcombine.low %v1079_v33, %v1095_v34  ;;  %v1097_v41 = vcombine.high %v1072_v31, %v1088_v32  ;;  %v1099_v42 = vcombine.high %v1079_v33, %v1095_v34 }
 0x4f6   :  { %v2779_v45 = vpack.c.bf16 %v1096_v37, %v1028_v35  ;;  %v2787_v46 = vpack.c.bf16 %v1098_v38, %v1030_v36  ;;  %v2791_v47 = vpack.c.bf16 %v1099_v42, %v1031_v39  ;;  %v2783_v61 = vpack.c.bf16 %v1097_v41, %v1029_v54 }
 0x4f8   :  { %2780 = vmatprep.subr.bf16.mxu1 %v2779_v45  ;;  %2788 = vmatprep.subr.bf16.mxu0 %v2787_v46 }
 0x4f9   :  { %2782 = vmatpush3.bf16.msra.mxu1 %v2779_v45  ;;  %2790 = vmatpush3.bf16.msra.mxu0 %v2787_v46 }
 0x4fa   :  { %2784 = vmatprep.subr.bf16.mxu1 %v2783_v61 }
 0x55e   :  { %v1505_v56 = vpop.xlane.xlu1 %1504 }
 0x55f   :  { %2865 = vrcp.f32 %v1505_v56 }
 0x562   :  { %v1502_v60 = vpop.xlane.xlu0 %1501  ;;  %v1511_v8 = vpop.xlane.xlu1 %1510 }
 0x563   :  { %2867 = vrcp.f32 %v1502_v60 }
 0x564   :  { %2869 = vrcp.f32 %v1511_v8 }
 0x566   :  { %v1508_v48 = vpop.xlane.xlu0 %1507 }
 0x567   :  { %2871 = vrcp.f32 %v1508_v48 }
 0x569   :  { %v2866_v49 = vpop.eup %2865 }
 0x56a   :  { %v1514_v2 = vpop.xlane.xlu0 %1513  ;;  %v1533_v52 = vmul.f32 %v2866_v49, %v3277_v55 }
 0x56b   :  { %2873 = vrcp.f32 %v1514_v2 }
 0x56c   :  { %v1523_v3 = vpop.xlane.xlu1 %1522 }
 0x56d   :  { %v2868_v16 = vpop.eup %2867  ;;  %2875 = vrcp.f32 %v1523_v3 }
 0x56e   :  { %v1520_v50 = vpop.xlane.xlu0 %1519  ;;  %v1532_v51 = vmul.f32 %v2868_v16, %v3283_v1  ;;  %v2870_v53 = vpop.eup %2869 }
 0x56f   :  { %2877 = vrcp.f32 %v1520_v50  ;;  %v1535_v62 = vmul.f32 %v2870_v53, %v3281_v63 }
 0x570   :  { %2682 = vmatprep.mubr.msk.f32.mxu1 %vm1451_vm7, %v1532_v51 }
 0x571   :  { %v2872_v57 = vpop.eup %2871  ;;  %2683 = vmatmul.mubr.msk.f32.vlgmr.msra.gmra.mrb[6].mxu1 %vm1451_vm7, %v1533_v52 }
 0x572   :  { %2786 = vmatpush3.bf16.msra.mxu1 %v2783_v61  ;;  %v1517_v58 = vpop.xlane.xlu0 %1516  ;;  %v1534_v59 = vmul.f32 %v2872_v57, %v3289_v23 }
 0x573   :  { %2792 = vmatprep.subr.bf16.mxu1 %v2791_v47  ;;  %2879 = vrcp.f32 %v1517_v58 }
 0x574   :  { %2689 = vmatprep.mubr.msk.f32.mxu1 %vm1451_vm7, %v1534_v59 }
 0x575   :  { %v2874_v1 = vpop.eup %2873  ;;  %2690 = vmatmul.mubr.msk.f32.vlgmr.msra.gmra.mrb[8].mxu1 %vm1451_vm7, %v1535_v62 }
 0x576   :  { %2794 = vmatpush3.bf16.msra.mxu1 %v2791_v47  ;;  %v1536_v55 = vmul.f32 %v2874_v1, %v3293_v43 }
 0x577   :  { %v2876_v0 = vpop.eup %2875 }
 0x578   :  { %2696 = vmatprep.mubr.msk.f32.mxu0 %vm1451_vm7, %v1536_v55  ;;  %v1539_v23 = vmul.f32 %v2876_v0, %v3299_v40 }
 0x579   :  { %v2878_v4 = vpop.eup %2877 }
 0x57a   :  { %v1538_v6 = vmul.f32 %v2878_v4, %v3295_v14 }
 0x57c   :  { %2703 = vmatprep.mubr.msk.f32.mxu1 %vm1451_vm7, %v1538_v6 }
 0x57d   :  { %v2880_v63 = vpop.eup %2879  ;;  %2704 = vmatmul.mubr.msk.f32.vlgmr.msra.gmra.mrb[10].mxu1 %vm1451_vm7, %v1539_v23 }
 0x57e   :  { %v1537_v7 = vmul.f32 %v2880_v63, %v3309_v29 }
 0x580   :  { %2697 = vmatmul.mubr.msk.f32.vlgmr.msra.gmra.mrb[4].mxu0 %vm1451_vm7, %v1537_v7 }
 0x644   :  { %v2684_v9 = vpop.f32.mrb[6].mxu1 }
 0x645   :  { %v1612_v22 = vpop.f32.mrb[7].mxu1 }
 0x648   :  { %v2691_v43 = vpop.f32.mrb[8].mxu1 }
 0x649   :  { %v1693_v27 = vpop.f32.mrb[9].mxu1 }
 0x650   :  { %v2705_v28 = vpop.f32.mrb[10].mxu1 }
 0x651   :  { %v1948_v10 = vcombine.low %v2691_v43, %v2705_v28  ;;  %v1949_v12 = vcombine.high %v2691_v43, %v2705_v28  ;;  %v1855_v13 = vpop.f32.mrb[11].mxu1 }
 0x652   :  { %v1880_v14 = vcombine.low %v1693_v27, %v1855_v13  ;;  %v1881_v15 = vcombine.high %v1693_v27, %v1855_v13 }
 0x653   :  { %v2698_v40 = vpop.f32.mrb[4].mxu0  ;;  %v1956_v29 = vrot.slane %v1948_v10, %v3107_v5  ;;  %v1963_v20 = vrot.slane %v1949_v12, %v3107_v5 }
 0x654   :  { %v1932_v39 = vcombine.low %v2684_v9, %v2698_v40  ;;  %v1933_v44 = vcombine.high %v2684_v9, %v2698_v40  ;;  %v1774_v17 = vpop.f32.mrb[5].mxu0  ;;  %v1888_v25 = vrot.slane %v1880_v14, %v3107_v5  ;;  %v1895_v26 = vrot.slane %v1881_v15, %v3107_v5  ;;  %v2168_v40 = vld [vmem:[%s3501_s3 + $0x8] sm:$0xff] }
 0x655   :  { %v1864_v18 = vcombine.low %v1612_v22, %v1774_v17  ;;  %v1865_v19 = vcombine.high %v1612_v22, %v1774_v17 }
 0x656   :  { %v1940_v21 = vrot.slane %v1932_v39, %v3107_v5  ;;  %v1947_v24 = vrot.slane %v1933_v44, %v3107_v5  ;;  %v2169_v39 = vld [vmem:[%s3501_s3 + $0x10] sm:$0xff]  ;;  %v2170_v44 = vld [vmem:[%s3501_s3 + $0x18] sm:$0xff] }
 0x657   :  { %v1872_v30 = vrot.slane %v1864_v18, %v3107_v5  ;;  %v1879_v31 = vrot.slane %v1865_v19, %v3107_v5 }
 0x658   :  { %v1964_v32 = vcombine.low %v1940_v21, %v1956_v29  ;;  %v1965_v33 = vcombine.high %v1940_v21, %v1956_v29  ;;  %v1980_v34 = vcombine.low %v1947_v24, %v1963_v20  ;;  %v1981_v35 = vcombine.high %v1947_v24, %v1963_v20 }
 0x659   :  { %v1896_v36 = vcombine.low %v1872_v30, %v1888_v25  ;;  %v1897_v37 = vcombine.high %v1872_v30, %v1888_v25  ;;  %v1912_v38 = vcombine.low %v1879_v31, %v1895_v26  ;;  %v1913_v41 = vcombine.high %v1879_v31, %v1895_v26 }
 0x65a   :  { %v1972_v42 = vrot.slane %v1964_v32, %v3121_v11  ;;  %v1979_v45 = vrot.slane %v1965_v33, %v3121_v11  ;;  %v1988_v46 = vrot.slane %v1980_v34, %v3121_v11  ;;  %v1995_v54 = vrot.slane %v1981_v35, %v3121_v11 }
 0x65b   :  { %v1904_v47 = vrot.slane %v1896_v36, %v3121_v11  ;;  %v1911_v61 = vrot.slane %v1897_v37, %v3121_v11  ;;  %v1920_v56 = vrot.slane %v1912_v38, %v3121_v11  ;;  %v1927_v60 = vrot.slane %v1913_v41, %v3121_v11 }
 0x65c   :  { %v2068_v8 = vcombine.low %v1972_v42, %v1979_v45  ;;  %v2566_v48 = vcombine.high %v1972_v42, %v1979_v45  ;;  %v2084_v2 = vcombine.low %v1988_v46, %v1995_v54  ;;  %v2567_v49 = vcombine.high %v1988_v46, %v1995_v54  ;;  %v2568_v46 = vld [vmem:[%s3504_s6 + $0x2] ss:$0 sm:$0xff] }
 0x65d   :  { %v2000_v3 = vcombine.low %v1904_v47, %v1911_v61  ;;  %v2564_v16 = vcombine.high %v1904_v47, %v1911_v61  ;;  %v2016_v50 = vcombine.low %v1920_v56, %v1927_v60  ;;  %v2565_v51 = vcombine.high %v1920_v56, %v1927_v60  ;;  %v2889_v60 = vld [vmem:[#allocation2 + $0x8] sm:$0xff] }
 0x65e   :  { %v2075_v52 = vrot.slane %v2068_v8, %v3107_v5  ;;  %v2083_v53 = vrot.slane %v2566_v48, %v3107_v5  ;;  %v2091_v57 = vrot.slane %v2084_v2, %v3107_v5  ;;  %v2099_v58 = vrot.slane %v2567_v49, %v3107_v5  ;;  %v2890_v48 = vld [vmem:[#allocation2] sm:$0xff] }
 0x65f   :  { %v2007_v59 = vrot.slane %v2000_v3, %v3107_v5  ;;  %v2015_v62 = vrot.slane %v2564_v16, %v3107_v5  ;;  %v2023_v1 = vrot.slane %v2016_v50, %v3107_v5  ;;  %v2031_v55 = vrot.slane %v2565_v51, %v3107_v5  ;;  %v2167_v5 = vld [vmem:[%s3501_s3] sm:$0xff]  ;;  %s2975_s3 = smov 24  }
 0x660   :  { %v2100_v0 = vcombine.low %v2075_v52, %v2083_v53  ;;  %v2116_v4 = vcombine.low %v2091_v57, %v2099_v58  ;;  %v2101_v6 = vcombine.high %v2075_v52, %v2083_v53  ;;  %v2117_v23 = vcombine.high %v2091_v57, %v2099_v58 }
 0x661   :  { %v2032_v63 = vcombine.low %v2007_v59, %v2015_v62  ;;  %v2048_v7 = vcombine.low %v2023_v1, %v2031_v55  ;;  %v2033_v9 = vcombine.high %v2007_v59, %v2015_v62  ;;  %v2049_v22 = vcombine.high %v2023_v1, %v2031_v55  ;;  %v2316_v55 = vld [vmem:[%s3502_s4] sm:$0xff] }
 0x662   :  { %v2108_v43 = vrot.slane %v2100_v0, %v3121_v11  ;;  %v2124_v27 = vrot.slane %v2116_v4, %v3121_v11  ;;  %v2115_v28 = vrot.slane %v2101_v6, %v3121_v11  ;;  %v2131_v10 = vrot.slane %v2117_v23, %v3121_v11  ;;  %v2317_v0 = vld [vmem:[%s3502_s4 + $0x8] sm:$0xff]  ;;  %v2318_v4 = vld [vmem:[%s3502_s4 + $0x10] sm:$0xff]  ;;  %v2319_v23 = vld [vmem:[%s3502_s4 + $0x18] sm:$0xff] }
 0x663   :  { %v2040_v12 = vrot.slane %v2032_v63, %v3121_v11  ;;  %v2056_v13 = vrot.slane %v2048_v7, %v3121_v11  ;;  %v2047_v14 = vrot.slane %v2033_v9, %v3121_v11  ;;  %v2063_v15 = vrot.slane %v2049_v22, %v3121_v11  ;;  %v2407_v7 = vld [vmem:[%s3503_s5] sm:$0xff]  ;;  %v2408_v9 = vld [vmem:[%s3503_s5 + $0x8] sm:$0xff]  ;;  %v2409_v22 = vld [vmem:[%s3503_s5 + $0x10] sm:$0xff] }
 0x664   :  { %v2133_v17 = vcombine.high %v2108_v43, %v2124_v27  ;;  %v2132_v18 = vcombine.low %v2108_v43, %v2124_v27  ;;  %v2134_v19 = vcombine.low %v2115_v28, %v2131_v10  ;;  %v2135_v29 = vcombine.high %v2115_v28, %v2131_v10  ;;  %v2410_v27 = vld [vmem:[%s3503_s5 + $0x18] sm:$0xff]  ;;  %v2411_v10 = vld [vmem:[%s3503_s5 + $0x20] sm:$0xff] }
 0x665   :  { %v2065_v20 = vcombine.high %v2040_v12, %v2056_v13  ;;  %v2064_v21 = vcombine.low %v2040_v12, %v2056_v13  ;;  %v2067_v24 = vcombine.high %v2047_v14, %v2063_v15  ;;  %v2066_v11 = vcombine.low %v2047_v14, %v2063_v15 }
 0x666   :  { %2140 = vrot.lane.b32.xlu1 %v2133_v17, %s2965_s16  ;;  %v2795_v25 = vpack.c.bf16 %v2168_v40, %v2167_v5  ;;  %v2799_v26 = vpack.c.bf16 %v2170_v44, %v2169_v39  ;;  %v2803_v6 = vpack.c.bf16 %v2317_v0, %v2316_v55  ;;  %v2807_v63 = vpack.c.bf16 %v2319_v23, %v2318_v4  ;;  %v2412_v5 = vld [vmem:[%s3503_s5 + $0x28] sm:$0xff] }
 0x667   :  { %2138 = vrot.lane.b32.xlu0 %v2065_v20, %s2965_s16  ;;  %v2811_v43 = vpack.c.bf16 %v2408_v9, %v2407_v7  ;;  %v2815_v28 = vpack.c.bf16 %v2410_v27, %v2409_v22  ;;  %v2819_v12 = vpack.c.bf16 %v2412_v5, %v2411_v10 }
 0x668   :  { %2796 = vmatprep.subr.bf16.mxu0 %v2795_v25  ;;  %2804 = vmatprep.subr.bf16.mxu1 %v2803_v6 }
 0x669   :  { %2798 = vmatpush3.bf16.msra.mxu0 %v2795_v25  ;;  %2806 = vmatpush3.bf16.msra.mxu1 %v2803_v6 }
 0x66a   :  { %2148 = vrot.lane.b32.xlu1 %v2134_v19, %s2974_s11  ;;  %2800 = vmatprep.subr.bf16.mxu0 %v2799_v26 }
 0x66b   :  { %2154 = vrot.lane.b32.xlu0 %v2067_v24, %s2975_s3  ;;  %2808 = vmatprep.subr.bf16.mxu1 %v2807_v63 }
 0x66d   :  { %2802 = vmatpush3.bf16.msra.mxu0 %v2799_v26  ;;  %2810 = vmatpush3.bf16.msra.mxu1 %v2807_v63 }
 0x66e   :  { %2146 = vrot.lane.b32.xlu1 %v2066_v11, %s2974_s11  ;;  %2812 = vmatprep.subr.bf16.mxu0 %v2811_v43 }
 0x672   :  { %2156 = vrot.lane.b32.xlu1 %v2135_v29, %s2975_s3 }
 0x6d8   :  { %v2141_v30 = vpop.permute.xlu1 %2140 }
 0x6d9   :  { %v2139_v31 = vpop.permute.xlu0 %2138  ;;  %v2161_v38 = vsel %vm1102_vm5, %v2132_v18, %v2141_v30 }
 0x6da   :  { %v2160_v33 = vsel %vm1102_vm5, %v2064_v21, %v2139_v31 }
 0x6dc   :  { %v2149_v32 = vpop.permute.xlu1 %2148 }
 0x6dd   :  { %v2155_v35 = vpop.permute.xlu0 %2154  ;;  %v2163_v41 = vsel %vm1451_vm7, %v2161_v38, %v2149_v32  ;;  %v2571_v32 = vld [vmem:[%s3504_s6 + $0x3] ss:$0 sm:$0xff]  ;;  %v2572_v38 = vld [vmem:[%s3504_s6 + $0x4] ss:$0 sm:$0xff] }
 0x6e0   :  { %v2147_v34 = vpop.permute.xlu1 %2146 }
 0x6e1   :  { %v2162_v36 = vsel %vm1451_vm7, %v2160_v33, %v2147_v34 }
 0x6e2   :  { %v2165_v37 = vsel %vm2164_vm8, %v2162_v36, %v2155_v35 }
 0x6e3   :  { %2714 = vmatprep.mubr.msk.f32.mxu0 %vm68_vm0, %v2165_v37 }
 0x6e4   :  { %v2157_v42 = vpop.permute.xlu1 %2156 }
 0x6e5   :  { %v2166_v45 = vsel %vm2164_vm8, %v2163_v41, %v2157_v42 }
 0x6e6   :  { %2715 = vmatmul.mubr.msk.f32.vlgmr.msra.gmra.mrb[6].mxu0 %vm68_vm0, %v2166_v45 }
 0x6e7   :  { %2814 = vmatpush3.bf16.msra.mxu0 %v2811_v43 }
 0x6e8   :  { %2816 = vmatprep.subr.bf16.mxu0 %v2815_v28 }
 0x6eb   :  { %2818 = vmatpush3.bf16.msra.mxu0 %v2815_v28 }
 0x6ec   :  { %2820 = vmatprep.subr.bf16.mxu0 %v2819_v12 }
 0x6ef   :  { %2822 = vmatpush3.bf16.msra.mxu0 %v2819_v12 }
 0x7b9   :  { %v2716_v54 = vpop.f32.mrb[6].mxu0 }
 0x7ba   :  { %v2253_v47 = vadd.f32 %v2716_v54, %v2568_v46  ;;  %v2247_v61 = vpop.f32.mrb[7].mxu0 }
 0x7bb   :  { %v2248_v56 = vadd.f32 %v2568_v46, %v2247_v61 }
 0x7bc   :  { %v3412_v8 = vadd.f32 %v2889_v60, %v2253_v47  ;;  %v2414_v60 = vld [vmem:[%s3503_s5 + $0x38] sm:$0xff] }
 0x7bd   :  { %v3414_v2 = vadd.f32 %v2890_v48, %v2248_v56  ;;  %v2413_v56 = vld [vmem:[%s3503_s5 + $0x30] sm:$0xff]  ;;  %s2976_s5 = smov [#allocation7]  }
 0x7be   :  { %v2261_v49 = vsel %vm68_vm0, %v3412_v8, 0.0  ;;  %v2823_v48 = vpack.c.bf16 %v2414_v60, %v2413_v56  ;;  %s2510_s22 = sshll.u32 %s2976_s5, 4  ;;  %s2511_s22 = int_to_ptr.vmem [resolvable:$true] %s2510_s22 }
 0x7bf   :  { %2262 = vadd.xlane.f32.xlu1 %v2261_v49  ;;  %v2258_v3 = vsel %vm68_vm0, %v3414_v2, 0.0  ;;  %v2573_v49 = vld [vmem:[%s3505_s7 + $0x1] ss:$0 sm:$0xff]  ;;  %s2935_s7 = scalar_lea.vmem %s2511_s22, 256  ;;  %p2940_p3 = scmp.lt.s32.totalorder %s2511_s22, %s2511_s22 }
 0x7c0   :  { %2259 = vadd.xlane.f32.xlu0 %v2258_v3  ;;  %2824 = vmatprep.subr.bf16.mxu0 %v2823_v48  ;;  %p2936_p2 = scmp.ne.s32.totalorder %s2511_s22, %s2935_s7  ;;  %p2941_p4 = scmp.lt.s32.totalorder %s2935_s7, %s2935_s7 }
 0x7c1   :  { %2826 = vmatpush3.bf16.msra.mxu0 %v2823_v48 }
 0x7c2   :  { %p2942_p5 = por %p2941_p4, %p2940_p3 }
 0x7c4   :  { %p2943_p6 = pnand %p2942_p5, %p2936_p2 }
 0x84c   :  { %v2263_v16 = vpop.xlane.xlu1 %2262 }
 0x84d   :  { %v2265_v50 = vmul.f32 0.03125, %v2263_v16  ;;  %v2260_v51 = vpop.xlane.xlu0 %2259 }
 0x84e   :  { %v2264_v52 = vmul.f32 0.03125, %v2260_v51 }
 0x84f   :  { %v3421_v53 = vsub.f32 %v3412_v8, %v2265_v50 }
 0x850   :  { %v2266_v57 = vsub.f32 %v3414_v2, %v2264_v52 }
 0x851   :  { %v2269_v62 = vmul.f32 %v3421_v53, %v3421_v53  ;;  %v2307_v45 = vmul.f32 %v2571_v32, %v3421_v53 }
 0x852   :  { %v2268_v58 = vmul.f32 %v2266_v57, %v2266_v57  ;;  %v2306_v35 = vmul.f32 %v2571_v32, %v2266_v57  ;;  %v2576_v57 = vld [vmem:[%s3504_s6 + $0x5] ss:$0 sm:$0xff] }
 0x853   :  { %v2273_v1 = vsel %vm68_vm0, %v2269_v62, 0.0 }
 0x854   :  { %v2270_v59 = vsel %vm68_vm0, %v2268_v58, 0.0 }
 0x855   :  { %2271 = vadd.xlane.f32.xlu0 %v2270_v59 }
 0x859   :  { %2274 = vadd.xlane.f32.xlu0 %v2273_v1 }
 0x8e2   :  { %v2272_v13 = vpop.xlane.xlu0 %2271 }
 0x8e3   :  { %v2276_v14 = vmul.f32 0.032258064, %v2272_v13 }
 0x8e5   :  { %2881 = vrsqrt.f32 %v2276_v14  ;;  %vm2280_vm9 = vcmp.eq.f32.partialorder %v2276_v14, inf  ;;  %v2283_v17 = vand.u32 2147483648, %v2276_v14  ;;  %vm2282_vm10 = vcmp.eq.f32.partialorder %v2276_v14, 0.0 }
 0x8e6   :  { %v2275_v15 = vpop.xlane.xlu0 %2274 }
 0x8e7   :  { %v2277_v40 = vmul.f32 0.032258064, %v2275_v15 }
 0x8e9   :  { %2883 = vrsqrt.f32 %v2277_v40  ;;  %vm2287_vm11 = vcmp.eq.f32.partialorder %v2277_v40, inf  ;;  %v2290_v24 = vand.u32 2147483648, %v2277_v40  ;;  %vm2289_vm12 = vcmp.eq.f32.partialorder %v2277_v40, 0.0 }
 0x8ef   :  { %v2882_v39 = vpop.eup %2881 }
 0x8f0   :  { %v2279_v44 = vmul.f32 %v2882_v39, %v2276_v14 }
 0x8f2   :  { %v2281_v18 = vsel %vm2280_vm9, %v2276_v14, %v2279_v44 }
 0x8f3   :  { %v2884_v19 = vpop.eup %2883  ;;  %v2284_v29 = vsel %vm2282_vm10, %v2283_v17, %v2281_v18 }
 0x8f4   :  { %v2286_v20 = vmul.f32 %v2884_v19, %v2277_v40  ;;  %v2292_v21 = vadd.f32 1e-06, %v2284_v29 }
 0x8f6   :  { %v2288_v11 = vsel %vm2287_vm11, %v2277_v40, %v2286_v20  ;;  %2885 = vrcp.f32 %v2292_v21 }
 0x8f7   :  { %v2291_v25 = vsel %vm2289_vm12, %v2290_v24, %v2288_v11 }
 0x8f8   :  { %v2293_v26 = vadd.f32 1e-06, %v2291_v25 }
 0x8fa   :  { %2887 = vrcp.f32 %v2293_v26 }
 0x900   :  { %v2886_v30 = vpop.eup %2885 }
 0x901   :  { %v2296_v31 = vmul.f32 %v2886_v30, %v2292_v21 }
 0x903   :  { %v2298_v33 = vsub.f32 2.0, %v2296_v31 }
 0x904   :  { %v2888_v34 = vpop.eup %2887 }
 0x905   :  { %v2297_v36 = vmul.f32 %v2888_v34, %v2293_v26  ;;  %v2300_v37 = vmul.f32 %v2886_v30, %v2298_v33 }
 0x907   :  { %v2299_v41 = vsub.f32 2.0, %v2297_v36  ;;  %v2308_v42 = vmul.f32 %v2306_v35, %v2300_v37 }
 0x909   :  { %v2301_v46 = vmul.f32 %v2888_v34, %v2299_v41  ;;  %v2314_v54 = vadd.f32 %v2572_v38, %v2308_v42 }
 0x90b   :  { %v2309_v47 = vmul.f32 %v2307_v45, %v2301_v46  ;;  %2725 = vmatprep.mubr.msk.f32.mxu1 %vm68_vm0, %v2314_v54 }
 0x90d   :  { %v2315_v61 = vadd.f32 %v2572_v38, %v2309_v47 }
 0x90f   :  { %2726 = vmatmul.mubr.msk.f32.vlgmr.msra.gmra.mrb[12].mxu1 %vm68_vm0, %v2315_v61 }
 0x9e2   :  { %v2727_v3 = vpop.f32.mrb[12].mxu1 }
 0x9e3   :  { %v2402_v16 = vadd.f32 %v2727_v3, %v2573_v49  ;;  %v2396_v50 = vpop.f32.mrb[13].mxu1 }
 0x9e4   :  { %v2397_v51 = vadd.f32 %v2573_v49, %v2396_v50 }
 0x9e5   :  { %v2406_v53 = vmax.f32 %v2402_v16, 0.0 }
 0x9e6   :  { %v2405_v52 = vmax.f32 %v2397_v51, 0.0 }
 0x9e8   :  { %2744 = vmatprep.mubr.msk.f32.mxu0 %vm2419_vm13, %v2405_v52 }
 0x9e9   :  { %2745 = vmatmul.mubr.msk.f32.vlgmr.msra.gmra.mrb[8].mxu0 %vm2419_vm13, %v2406_v53 }
 0xabc   :  { %v2746_v58 = vpop.f32.mrb[8].mxu0 }
 0xabd   :  { %v2498_v59 = vadd.f32 %v2746_v58, %v2576_v57  ;;  %v2492_v62 = vpop.f32.mrb[9].mxu0 }
 0xabe   :  { %v2493_v1 = vadd.f32 %v2576_v57, %v2492_v62 }
 0xabf   :  { %v2502_v55 = vadd.f32 %v2498_v59, %v3412_v8 }
 0xac0   :  { %v2501_v0 = vadd.f32 %v2493_v1, %v3414_v2 }
 0xac1   :  { %2504 = vst.msk [vmem:[#allocation7 + $0x8] sm:$0xff] %vm68_vm0, %v2502_v55 }
 0xac2   :  { %2503 = vst.msk [vmem:[#allocation7] sm:$0xff] %vm68_vm0, %v2501_v0 }
 0xac3   :  { %2946 = shalt.err (!%p2943_p6)
}
 0xac4   :  { %s2947_s24 = scalar_lea.hbm %s3506_s8, 256 }
 0xac5   :  { %p2948_p7 = scmp.ne.s32.totalorder %s3506_s8, %s2947_s24  ;;  %p2951_p8 = scmp.lt.u32.totalorder %s2947_s24, %s3506_s8 }
 0xac7   :  { %p2953_p9 = pnand %p2951_p8, %p2948_p7 }
 0xac9   :  { %2956 = shalt.err (!%p2953_p9)
}
 0xaca   :  { %2516 = dma.vmem_to_hbm [thread:$0]  %s2511_s22, 256, %s3506_s8, [#allocation4], %s2964_s15, %s2964_s15, %s2965_s16  }
 0xacb   :  { %2961 = dma.done.wait [#allocation4], 256  }
 0xacc   :  { %2962 = vsyncadd [#allocation4], 4294967040 }
 0xacd   :  { %2520 = vsyncpa [#allocation3], 1 }
 0xace   :  { %2521 = vsyncpa [#allocation6], 1 }
 0xacf   :  { %2522 = vsyncpa [#allocation4], 1 }

</bundles_post_ra>
